<compile_context>
chip_gen: v7x
topology: tpu7x:2x2x1
jax: 0.10.0
libtpu: 0.0.40
codegen_flags: <defaults>
</compile_context>

<pallas_src>
import functools

import jax
import jax.numpy as jnp
from jax import lax
from jax.experimental import pallas as pl
from jax.experimental.pallas import tpu as pltpu


def _round_up(v, m):
    return (v + m - 1) // m * m


def dense_graph_conv_kernel(x_ref, adj_ref, w_rel_ref, b_rel_ref, w_root_ref,
                            o_ref, *, t_chunk):
    """One (batch, time-block) grid step.

    Shapes seen by the kernel (batch dim squeezed away by BlockSpec):
      x_ref:      (t_tile, N, C)
      adj_ref:    (N, N)
      w_rel_ref:  (C, F)   lin_rel weight, transposed
      b_rel_ref:  (1, F)   lin_rel bias, f32
      w_root_ref: (C, F)   lin_root weight, transposed
      o_ref:      (t_tile, N, F)
    """
    t_tile, n, c = x_ref.shape
    f = o_ref.shape[-1]

    # Block-resident small operands: load once per grid step (hoisted out of the
    # chunk loop). adj stays f32 -> exact for weighted adjacency too.
    adj = adj_ref[...].astype(jnp.float32)
    w_rel = w_rel_ref[...]
    w_root = w_root_ref[...]
    bias = b_rel_ref[...].astype(jnp.float32)

    num_chunks = t_tile // t_chunk

    def chunk_body(ci, carry):
        t0 = pl.multiple_of(ci * t_chunk, t_chunk)
        x_chunk = x_ref[pl.ds(t0, t_chunk)]                     # (t_chunk, N, C)
        x_flat = x_chunk.reshape(t_chunk * n, c)                 # N % 8 == 0 -> free

        # One MXU matmul per linear layer for the whole chunk, f32 accumulation.
        h_rel = jnp.dot(x_flat, w_rel, preferred_element_type=jnp.float32)
        h_root = jnp.dot(x_flat, w_root, preferred_element_type=jnp.float32) + bias

        h_rel = h_rel.reshape(t_chunk, n, f)
        h_root = h_root.reshape(t_chunk, n, f)

        # Neighborhood aggregation (aggr='add'), reassociated: adj @ (x @ W_rel).
        # t_chunk is small by construction, so this static unroll keeps live
        # ranges bounded while the outer fori_loop bounds total code size.
        for t in range(t_chunk):
            agg_t = jnp.dot(adj, h_rel[t], preferred_element_type=jnp.float32)
            o_ref[t0 + t] = (agg_t + h_root[t]).astype(o_ref.dtype)
        return carry

    lax.fori_loop(0, num_chunks, chunk_body, 0, unroll=False)


def _pick_t_tile(T, B, N, C, F, itemsize, target_bytes=4 << 20):
    """Largest time-tile whose bigger (x | out) HBM block is ~target_bytes."""
    row_bytes = max(1, N * max(C, F) * itemsize)
    cap = max(1, int(target_bytes // row_bytes))
    cap = min(cap, T)
    if B == 1 and T >= 2:
        cap = min(cap, (T + 1) // 2)      # keep >= 2 parallel steps (v7x: 2 TCs)
    cap = max(cap, 1)
    # Prefer a divisor of T reasonably close to cap (avoids padding T)...
    for cand in range(cap, cap // 2, -1):
        if T % cand == 0:
            return cand
    # ...otherwise take cap and let the caller pad T up to a multiple of it.
    return cap


def _pick_t_chunk(t_tile, N, target_rows=512):
    """Largest divisor of t_tile with ~target_rows rows per compute chunk."""
    cand = max(1, min(t_tile, target_rows // max(N, 1)))
    while t_tile % cand:
        cand -= 1
    return max(cand, 1)


def dense_graph_conv(x, adj, w_rel, b_rel, w_root, *, t_tile=None):
    """DenseGraphConv forward (aggr='add', mask=None).

    x: (B, T, N, C); adj: (B, N, N) or (N, N) (batch-broadcastable);
    w_rel / w_root: (F, C) torch.nn.Linear weights; b_rel: (F,).
    Returns (B, T, N, F) in x.dtype.
    """
    # TODO(synk): aggr='mean'/'max' and the optional node mask are not
    # implemented (default aggr='add', mask=None path only).
    if x.ndim == 3:
        x = x[None]
    if adj.ndim == 2:
        adj = adj[None]
    B, T, N, C = x.shape
    F = w_rel.shape[0]
    out_dtype = x.dtype
    itemsize = jnp.dtype(x.dtype).itemsize

    # --- sublane alignment: pad the node axis to a multiple of 8 --------------
    N_pad = _round_up(N, 8)
    if N_pad != N:
        x = jnp.pad(x, ((0, 0), (0, 0), (0, N_pad - N), (0, 0)))
        adj = jnp.pad(adj, ((0, 0), (0, N_pad - N), (0, N_pad - N)))

    # --- time tiling: big HBM blocks; pad ragged T instead of t_tile=1 --------
    if t_tile is None:
        t_tile = _pick_t_tile(T, B, N_pad, C, F, itemsize)
    t_tile = max(1, min(t_tile, T))
    T_pad = _round_up(T, t_tile)
    if T_pad != T:
        x = jnp.pad(x, ((0, 0), (0, T_pad - T), (0, 0), (0, 0)))
    t_chunk = _pick_t_chunk(t_tile, N_pad)

    # Weights / bias: no lane padding — C and F blocks use the full array dims.
    w_rel_t = jnp.asarray(w_rel).T.astype(x.dtype)        # (C, F)
    w_root_t = jnp.asarray(w_root).T.astype(x.dtype)      # (C, F)
    b_rel_2d = jnp.asarray(b_rel, dtype=jnp.float32).reshape(1, F)

    grid = (B, T_pad // t_tile)
    adj_index = (lambda b, t: (0, 0, 0)) if adj.shape[0] == 1 else (lambda b, t: (b, 0, 0))

    # VMEM budget: double-buffered x / out blocks + adj + weights, 2x headroom,
    # capped so the same tiling fits v7x's 64 MiB physical VMEM.
    vmem_est = (2 * t_tile * N_pad * C * itemsize
                + 2 * t_tile * N_pad * F * jnp.dtype(out_dtype).itemsize
                + 2 * N_pad * N_pad * jnp.dtype(adj.dtype).itemsize
                + 2 * (2 * C * F + F) * 4)
    vmem_limit = int(min(48 << 20, max(24 << 20, 2 * vmem_est)))

    kernel = functools.partial(dense_graph_conv_kernel, t_chunk=t_chunk)

    out = pl.pallas_call(
        kernel,
        out_shape=jax.ShapeDtypeStruct((B, T_pad, N_pad, F), out_dtype),
        grid_spec=pltpu.PrefetchScalarGridSpec(
            num_scalar_prefetch=0,
            grid=grid,
            in_specs=[
                pl.BlockSpec((pl.Squeezed(), t_tile, N_pad, C),
                             lambda b, t: (b, t, 0, 0)),
                # TODO(synk): for very large N on v7x (64 MiB VMEM), row-tile adj
                # via an extra 'parallel' node grid axis instead of the full (N, N).
                pl.BlockSpec((pl.Squeezed(), N_pad, N_pad), adj_index),
                pl.BlockSpec((C, F), lambda b, t: (0, 0)),
                pl.BlockSpec((1, F), lambda b, t: (0, 0)),
                pl.BlockSpec((C, F), lambda b, t: (0, 0)),
            ],
            out_specs=pl.BlockSpec((pl.Squeezed(), t_tile, N_pad, F),
                                   lambda b, t: (b, t, 0, 0)),
        ),
        compiler_params=pltpu.CompilerParams(
            dimension_semantics=("parallel", "parallel"),
            vmem_limit_bytes=vmem_limit,
        ),
    )(x, adj, w_rel_t, b_rel_2d, w_root_t)

    if T_pad != T:
        out = out[:, :T]
    if N_pad != N:
        out = out[:, :, :N]
    return out


def reference(x, adj, w_rel, b_rel, w_root):
    agg = jnp.einsum('btjk,bij->btik', x, adj)
    out = agg @ w_rel.T + b_rel
    out = out + x @ w_root.T
    return out


if __name__ == "__main__":
    key = jax.random.PRNGKey(0)
    B, T, N, C, F = 2, 8, 16, 32, 32

    kx, kadj, kwr, kbr, kwo = jax.random.split(key, 5)

    x = jax.random.normal(kx, (B, T, N, C), dtype=jnp.float32)
    # Binary adjacency with self-loops (weighted adjacency also supported: the
    # kernel keeps adj in f32).
    adj = (jax.random.uniform(kadj, (B, N, N)) > 0.7).astype(jnp.float32)
    adj = jnp.maximum(adj, jnp.eye(N, dtype=jnp.float32)[None])

    # PyTorch-Linear-style init: U(-1/sqrt(C), 1/sqrt(C)).
    bound = 1.0 / (C ** 0.5)
    w_rel = jax.random.uniform(kwr, (F, C), minval=-bound, maxval=bound, dtype=jnp.float32)
    b_rel = jax.random.uniform(kbr, (F,), minval=-bound, maxval=bound, dtype=jnp.float32)
    w_root = jax.random.uniform(kwo, (F, C), minval=-bound, maxval=bound, dtype=jnp.float32)

    ref = reference(x, adj, w_rel, b_rel, w_root)
    out = jax.block_until_ready(dense_graph_conv(x, adj, w_rel, b_rel, w_root))
    assert out.shape == (B, T, N, F), out.shape
    assert jnp.allclose(out, ref, atol=1e-4, rtol=1e-4), \
        float(jnp.max(jnp.abs(out - ref)))

    # Ragged-T / B=1 case with batch-broadcast adjacency: exercises the
    # T-padding path, the >=2-parallel-steps cap, and the adj broadcast map.
    x2 = jax.random.normal(kx, (1, 5, N, C), dtype=jnp.float32)
    adj2 = adj[:1]
    ref2 = reference(x2, adj2, w_rel, b_rel, w_root)
    out2 = jax.block_until_ready(dense_graph_conv(x2, adj2, w_rel, b_rel, w_root))
    assert out2.shape == (1, 5, N, F), out2.shape
    assert jnp.allclose(out2, ref2, atol=1e-4, rtol=1e-4), \
        float(jnp.max(jnp.abs(out2 - ref2)))

    print("KERNEL_OK")
</pallas_src>

<mosaic_0001>
module attributes {stable_mosaic.version = 11 : i64} {
  func.func @dense_graph_conv_kernel(%arg0: i32, %arg1: i32, %arg2: memref<1x8x16x32xf32, #tpu.memory_space<vmem>>, %arg3: memref<1x16x16xf32, #tpu.memory_space<vmem>>, %arg4: memref<32x32xf32, #tpu.memory_space<vmem>>, %arg5: memref<1x32xf32, #tpu.memory_space<vmem>>, %arg6: memref<32x32xf32, #tpu.memory_space<vmem>>, %arg7: memref<1x8x16x32xf32, #tpu.memory_space<vmem>>) attributes {dimension_semantics = [#tpu.dimension_semantics<parallel>, #tpu.dimension_semantics<parallel>], iteration_bounds = array<i64: 2, 1>, scalar_prefetch = 0 : i64, scratch_operands = 0 : i64, tpu.core_type = #tpu.core_type<tc>, window_params = [{transform_indices = @transform_0, window_bounds = array<i64: 1, 8, 16, 32>}, {transform_indices = @transform_1, window_bounds = array<i64: 1, 16, 16>}, {pipeline_mode = #tpu.pipeline_mode<synchronous>, transform_indices = @transform_2, window_bounds = array<i64: 32, 32>}, {pipeline_mode = #tpu.pipeline_mode<synchronous>, transform_indices = @transform_3, window_bounds = array<i64: 1, 32>}, {pipeline_mode = #tpu.pipeline_mode<synchronous>, transform_indices = @transform_4, window_bounds = array<i64: 32, 32>}, {transform_indices = @transform_5, window_bounds = array<i64: 1, 8, 16, 32>}]} {
    %c0 = arith.constant 0 : index
    %c0_0 = arith.constant 0 : index
    %c0_1 = arith.constant 0 : index
    %0 = vector.load %arg3[%c0, %c0_0, %c0_1] : memref<1x16x16xf32, #tpu.memory_space<vmem>>, vector<1x16x16xf32>
    %1 = vector.shape_cast %0 : vector<1x16x16xf32> to vector<16x16xf32>
    %c0_2 = arith.constant 0 : index
    %c0_3 = arith.constant 0 : index
    %2 = vector.load %arg4[%c0_2, %c0_3] : memref<32x32xf32, #tpu.memory_space<vmem>>, vector<32x32xf32>
    %c0_4 = arith.constant 0 : index
    %c0_5 = arith.constant 0 : index
    %3 = vector.load %arg6[%c0_4, %c0_5] : memref<32x32xf32, #tpu.memory_space<vmem>>, vector<32x32xf32>
    %c0_6 = arith.constant 0 : index
    %c0_7 = arith.constant 0 : index
    %4 = vector.load %arg5[%c0_6, %c0_7] : memref<1x32xf32, #tpu.memory_space<vmem>>, vector<1x32xf32>
    %c0_i32 = arith.constant 0 : i32
    %c8_i32 = arith.constant 8 : i32
    %5 = arith.muli %c0_i32, %c8_i32 : i32
    %6 = tpu.assume_multiple %5, 8 : i32
    %c0_8 = arith.constant 0 : index
    %7 = arith.index_cast %6 : i32 to index
    %c0_9 = arith.constant 0 : index
    %c0_10 = arith.constant 0 : index
    %8 = vector.load %arg2[%c0_8, %7, %c0_9, %c0_10] : memref<1x8x16x32xf32, #tpu.memory_space<vmem>>, vector<1x8x16x32xf32>
    %9 = vector.shape_cast %8 : vector<1x8x16x32xf32> to vector<8x16x32xf32>
    %10 = vector.shape_cast %9 : vector<8x16x32xf32> to vector<128x32xf32>
    %cst = arith.constant dense<0.000000e+00> : vector<128x32xf32>
    %11 = tpu.matmul %10, %2, %cst {dimension_numbers = #tpu.dot_dimension_numbers<[1], [0], [0], [1], [0, 0, 1, 1], [], []>} : vector<128x32xf32>, vector<32x32xf32>, vector<128x32xf32> -> vector<128x32xf32>
    %cst_11 = arith.constant dense<0.000000e+00> : vector<128x32xf32>
    %12 = tpu.matmul %10, %3, %cst_11 {dimension_numbers = #tpu.dot_dimension_numbers<[1], [0], [0], [1], [0, 0, 1, 1], [], []>} : vector<128x32xf32>, vector<32x32xf32>, vector<128x32xf32> -> vector<128x32xf32>
    %13 = vector.broadcast %4 : vector<1x32xf32> to vector<128x32xf32>
    %14 = arith.addf %12, %13 : vector<128x32xf32>
    %15 = vector.shape_cast %11 : vector<128x32xf32> to vector<8x16x32xf32>
    %16 = vector.shape_cast %14 : vector<128x32xf32> to vector<8x16x32xf32>
    %17 = vector.extract_strided_slice %15 {offsets = [0, 0, 0], sizes = [1, 16, 32], strides = [1, 1, 1]} : vector<8x16x32xf32> to vector<1x16x32xf32>
    %18 = vector.shape_cast %17 : vector<1x16x32xf32> to vector<16x32xf32>
    %cst_12 = arith.constant dense<0.000000e+00> : vector<16x32xf32>
    %19 = tpu.matmul %1, %18, %cst_12 {dimension_numbers = #tpu.dot_dimension_numbers<[1], [0], [0], [1], [0, 0, 1, 1], [], []>} : vector<16x16xf32>, vector<16x32xf32>, vector<16x32xf32> -> vector<16x32xf32>
    %20 = vector.extract_strided_slice %16 {offsets = [0, 0, 0], sizes = [1, 16, 32], strides = [1, 1, 1]} : vector<8x16x32xf32> to vector<1x16x32xf32>
    %21 = vector.shape_cast %20 : vector<1x16x32xf32> to vector<16x32xf32>
    %22 = arith.addf %19, %21 : vector<16x32xf32>
    %c0_i32_13 = arith.constant 0 : i32
    %23 = arith.addi %6, %c0_i32_13 : i32
    %c0_14 = arith.constant 0 : index
    %24 = arith.index_cast %23 : i32 to index
    %c0_15 = arith.constant 0 : index
    %c0_16 = arith.constant 0 : index
    %25 = vector.load %arg7[%c0_14, %24, %c0_15, %c0_16] : memref<1x8x16x32xf32, #tpu.memory_space<vmem>>, vector<1x1x16x32xf32>
    %26 = vector.shape_cast %25 : vector<1x1x16x32xf32> to vector<16x32xf32>
    %27 = vector.shape_cast %22 : vector<16x32xf32> to vector<1x1x16x32xf32>
    tpu.vector_store %arg7[%c0_14, %24, %c0_15, %c0_16], %27 {strides = array<i32>} : memref<1x8x16x32xf32, #tpu.memory_space<vmem>>, vector<1x1x16x32xf32>,
    %28 = vector.extract_strided_slice %15 {offsets = [1, 0, 0], sizes = [1, 16, 32], strides = [1, 1, 1]} : vector<8x16x32xf32> to vector<1x16x32xf32>
    %29 = vector.shape_cast %28 : vector<1x16x32xf32> to vector<16x32xf32>
    %cst_17 = arith.constant dense<0.000000e+00> : vector<16x32xf32>
    %30 = tpu.matmul %1, %29, %cst_17 {dimension_numbers = #tpu.dot_dimension_numbers<[1], [0], [0], [1], [0, 0, 1, 1], [], []>} : vector<16x16xf32>, vector<16x32xf32>, vector<16x32xf32> -> vector<16x32xf32>
    %31 = vector.extract_strided_slice %16 {offsets = [1, 0, 0], sizes = [1, 16, 32], strides = [1, 1, 1]} : vector<8x16x32xf32> to vector<1x16x32xf32>
    %32 = vector.shape_cast %31 : vector<1x16x32xf32> to vector<16x32xf32>
    %33 = arith.addf %30, %32 : vector<16x32xf32>
    %c1_i32 = arith.constant 1 : i32
    %34 = arith.addi %6, %c1_i32 : i32
    %c0_18 = arith.constant 0 : index
    %35 = arith.index_cast %34 : i32 to index
    %c0_19 = arith.constant 0 : index
    %c0_20 = arith.constant 0 : index
    %36 = vector.load %arg7[%c0_18, %35, %c0_19, %c0_20] : memref<1x8x16x32xf32, #tpu.memory_space<vmem>>, vector<1x1x16x32xf32>
    %37 = vector.shape_cast %36 : vector<1x1x16x32xf32> to vector<16x32xf32>
    %38 = vector.shape_cast %33 : vector<16x32xf32> to vector<1x1x16x32xf32>
    tpu.vector_store %arg7[%c0_18, %35, %c0_19, %c0_20], %38 {strides = array<i32>} : memref<1x8x16x32xf32, #tpu.memory_space<vmem>>, vector<1x1x16x32xf32>,
    %39 = vector.extract_strided_slice %15 {offsets = [2, 0, 0], sizes = [1, 16, 32], strides = [1, 1, 1]} : vector<8x16x32xf32> to vector<1x16x32xf32>
    %40 = vector.shape_cast %39 : vector<1x16x32xf32> to vector<16x32xf32>
    %cst_21 = arith.constant dense<0.000000e+00> : vector<16x32xf32>
    %41 = tpu.matmul %1, %40, %cst_21 {dimension_numbers = #tpu.dot_dimension_numbers<[1], [0], [0], [1], [0, 0, 1, 1], [], []>} : vector<16x16xf32>, vector<16x32xf32>, vector<16x32xf32> -> vector<16x32xf32>
    %42 = vector.extract_strided_slice %16 {offsets = [2, 0, 0], sizes = [1, 16, 32], strides = [1, 1, 1]} : vector<8x16x32xf32> to vector<1x16x32xf32>
    %43 = vector.shape_cast %42 : vector<1x16x32xf32> to vector<16x32xf32>
    %44 = arith.addf %41, %43 : vector<16x32xf32>
    %c2_i32 = arith.constant 2 : i32
    %45 = arith.addi %6, %c2_i32 : i32
    %c0_22 = arith.constant 0 : index
    %46 = arith.index_cast %45 : i32 to index
    %c0_23 = arith.constant 0 : index
    %c0_24 = arith.constant 0 : index
    %47 = vector.load %arg7[%c0_22, %46, %c0_23, %c0_24] : memref<1x8x16x32xf32, #tpu.memory_space<vmem>>, vector<1x1x16x32xf32>
    %48 = vector.shape_cast %47 : vector<1x1x16x32xf32> to vector<16x32xf32>
    %49 = vector.shape_cast %44 : vector<16x32xf32> to vector<1x1x16x32xf32>
    tpu.vector_store %arg7[%c0_22, %46, %c0_23, %c0_24], %49 {strides = array<i32>} : memref<1x8x16x32xf32, #tpu.memory_space<vmem>>, vector<1x1x16x32xf32>,
    %50 = vector.extract_strided_slice %15 {offsets = [3, 0, 0], sizes = [1, 16, 32], strides = [1, 1, 1]} : vector<8x16x32xf32> to vector<1x16x32xf32>
    %51 = vector.shape_cast %50 : vector<1x16x32xf32> to vector<16x32xf32>
    %cst_25 = arith.constant dense<0.000000e+00> : vector<16x32xf32>
    %52 = tpu.matmul %1, %51, %cst_25 {dimension_numbers = #tpu.dot_dimension_numbers<[1], [0], [0], [1], [0, 0, 1, 1], [], []>} : vector<16x16xf32>, vector<16x32xf32>, vector<16x32xf32> -> vector<16x32xf32>
    %53 = vector.extract_strided_slice %16 {offsets = [3, 0, 0], sizes = [1, 16, 32], strides = [1, 1, 1]} : vector<8x16x32xf32> to vector<1x16x32xf32>
    %54 = vector.shape_cast %53 : vector<1x16x32xf32> to vector<16x32xf32>
    %55 = arith.addf %52, %54 : vector<16x32xf32>
    %c3_i32 = arith.constant 3 : i32
    %56 = arith.addi %6, %c3_i32 : i32
    %c0_26 = arith.constant 0 : index
    %57 = arith.index_cast %56 : i32 to index
    %c0_27 = arith.constant 0 : index
    %c0_28 = arith.constant 0 : index
    %58 = vector.load %arg7[%c0_26, %57, %c0_27, %c0_28] : memref<1x8x16x32xf32, #tpu.memory_space<vmem>>, vector<1x1x16x32xf32>
    %59 = vector.shape_cast %58 : vector<1x1x16x32xf32> to vector<16x32xf32>
    %60 = vector.shape_cast %55 : vector<16x32xf32> to vector<1x1x16x32xf32>
    tpu.vector_store %arg7[%c0_26, %57, %c0_27, %c0_28], %60 {strides = array<i32>} : memref<1x8x16x32xf32, #tpu.memory_space<vmem>>, vector<1x1x16x32xf32>,
    %61 = vector.extract_strided_slice %15 {offsets = [4, 0, 0], sizes = [1, 16, 32], strides = [1, 1, 1]} : vector<8x16x32xf32> to vector<1x16x32xf32>
    %62 = vector.shape_cast %61 : vector<1x16x32xf32> to vector<16x32xf32>
    %cst_29 = arith.constant dense<0.000000e+00> : vector<16x32xf32>
    %63 = tpu.matmul %1, %62, %cst_29 {dimension_numbers = #tpu.dot_dimension_numbers<[1], [0], [0], [1], [0, 0, 1, 1], [], []>} : vector<16x16xf32>, vector<16x32xf32>, vector<16x32xf32> -> vector<16x32xf32>
    %64 = vector.extract_strided_slice %16 {offsets = [4, 0, 0], sizes = [1, 16, 32], strides = [1, 1, 1]} : vector<8x16x32xf32> to vector<1x16x32xf32>
    %65 = vector.shape_cast %64 : vector<1x16x32xf32> to vector<16x32xf32>
    %66 = arith.addf %63, %65 : vector<16x32xf32>
    %c4_i32 = arith.constant 4 : i32
    %67 = arith.addi %6, %c4_i32 : i32
    %c0_30 = arith.constant 0 : index
    %68 = arith.index_cast %67 : i32 to index
    %c0_31 = arith.constant 0 : index
    %c0_32 = arith.constant 0 : index
    %69 = vector.load %arg7[%c0_30, %68, %c0_31, %c0_32] : memref<1x8x16x32xf32, #tpu.memory_space<vmem>>, vector<1x1x16x32xf32>
    %70 = vector.shape_cast %69 : vector<1x1x16x32xf32> to vector<16x32xf32>
    %71 = vector.shape_cast %66 : vector<16x32xf32> to vector<1x1x16x32xf32>
    tpu.vector_store %arg7[%c0_30, %68, %c0_31, %c0_32], %71 {strides = array<i32>} : memref<1x8x16x32xf32, #tpu.memory_space<vmem>>, vector<1x1x16x32xf32>,
    %72 = vector.extract_strided_slice %15 {offsets = [5, 0, 0], sizes = [1, 16, 32], strides = [1, 1, 1]} : vector<8x16x32xf32> to vector<1x16x32xf32>
    %73 = vector.shape_cast %72 : vector<1x16x32xf32> to vector<16x32xf32>
    %cst_33 = arith.constant dense<0.000000e+00> : vector<16x32xf32>
    %74 = tpu.matmul %1, %73, %cst_33 {dimension_numbers = #tpu.dot_dimension_numbers<[1], [0], [0], [1], [0, 0, 1, 1], [], []>} : vector<16x16xf32>, vector<16x32xf32>, vector<16x32xf32> -> vector<16x32xf32>
    %75 = vector.extract_strided_slice %16 {offsets = [5, 0, 0], sizes = [1, 16, 32], strides = [1, 1, 1]} : vector<8x16x32xf32> to vector<1x16x32xf32>
    %76 = vector.shape_cast %75 : vector<1x16x32xf32> to vector<16x32xf32>
    %77 = arith.addf %74, %76 : vector<16x32xf32>
    %c5_i32 = arith.constant 5 : i32
    %78 = arith.addi %6, %c5_i32 : i32
    %c0_34 = arith.constant 0 : index
    %79 = arith.index_cast %78 : i32 to index
    %c0_35 = arith.constant 0 : index
    %c0_36 = arith.constant 0 : index
    %80 = vector.load %arg7[%c0_34, %79, %c0_35, %c0_36] : memref<1x8x16x32xf32, #tpu.memory_space<vmem>>, vector<1x1x16x32xf32>
    %81 = vector.shape_cast %80 : vector<1x1x16x32xf32> to vector<16x32xf32>
    %82 = vector.shape_cast %77 : vector<16x32xf32> to vector<1x1x16x32xf32>
    tpu.vector_store %arg7[%c0_34, %79, %c0_35, %c0_36], %82 {strides = array<i32>} : memref<1x8x16x32xf32, #tpu.memory_space<vmem>>, vector<1x1x16x32xf32>,
    %83 = vector.extract_strided_slice %15 {offsets = [6, 0, 0], sizes = [1, 16, 32], strides = [1, 1, 1]} : vector<8x16x32xf32> to vector<1x16x32xf32>
    %84 = vector.shape_cast %83 : vector<1x16x32xf32> to vector<16x32xf32>
    %cst_37 = arith.constant dense<0.000000e+00> : vector<16x32xf32>
    %85 = tpu.matmul %1, %84, %cst_37 {dimension_numbers = #tpu.dot_dimension_numbers<[1], [0], [0], [1], [0, 0, 1, 1], [], []>} : vector<16x16xf32>, vector<16x32xf32>, vector<16x32xf32> -> vector<16x32xf32>
    %86 = vector.extract_strided_slice %16 {offsets = [6, 0, 0], sizes = [1, 16, 32], strides = [1, 1, 1]} : vector<8x16x32xf32> to vector<1x16x32xf32>
    %87 = vector.shape_cast %86 : vector<1x16x32xf32> to vector<16x32xf32>
    %88 = arith.addf %85, %87 : vector<16x32xf32>
    %c6_i32 = arith.constant 6 : i32
    %89 = arith.addi %6, %c6_i32 : i32
    %c0_38 = arith.constant 0 : index
    %90 = arith.index_cast %89 : i32 to index
    %c0_39 = arith.constant 0 : index
    %c0_40 = arith.constant 0 : index
    %91 = vector.load %arg7[%c0_38, %90, %c0_39, %c0_40] : memref<1x8x16x32xf32, #tpu.memory_space<vmem>>, vector<1x1x16x32xf32>
    %92 = vector.shape_cast %91 : vector<1x1x16x32xf32> to vector<16x32xf32>
    %93 = vector.shape_cast %88 : vector<16x32xf32> to vector<1x1x16x32xf32>
    tpu.vector_store %arg7[%c0_38, %90, %c0_39, %c0_40], %93 {strides = array<i32>} : memref<1x8x16x32xf32, #tpu.memory_space<vmem>>, vector<1x1x16x32xf32>,
    %94 = vector.extract_strided_slice %15 {offsets = [7, 0, 0], sizes = [1, 16, 32], strides = [1, 1, 1]} : vector<8x16x32xf32> to vector<1x16x32xf32>
    %95 = vector.shape_cast %94 : vector<1x16x32xf32> to vector<16x32xf32>
    %cst_41 = arith.constant dense<0.000000e+00> : vector<16x32xf32>
    %96 = tpu.matmul %1, %95, %cst_41 {dimension_numbers = #tpu.dot_dimension_numbers<[1], [0], [0], [1], [0, 0, 1, 1], [], []>} : vector<16x16xf32>, vector<16x32xf32>, vector<16x32xf32> -> vector<16x32xf32>
    %97 = vector.extract_strided_slice %16 {offsets = [7, 0, 0], sizes = [1, 16, 32], strides = [1, 1, 1]} : vector<8x16x32xf32> to vector<1x16x32xf32>
    %98 = vector.shape_cast %97 : vector<1x16x32xf32> to vector<16x32xf32>
    %99 = arith.addf %96, %98 : vector<16x32xf32>
    %c7_i32 = arith.constant 7 : i32
    %100 = arith.addi %6, %c7_i32 : i32
    %c0_42 = arith.constant 0 : index
    %101 = arith.index_cast %100 : i32 to index
    %c0_43 = arith.constant 0 : index
    %c0_44 = arith.constant 0 : index
    %102 = vector.load %arg7[%c0_42, %101, %c0_43, %c0_44] : memref<1x8x16x32xf32, #tpu.memory_space<vmem>>, vector<1x1x16x32xf32>
    %103 = vector.shape_cast %102 : vector<1x1x16x32xf32> to vector<16x32xf32>
    %104 = vector.shape_cast %99 : vector<16x32xf32> to vector<1x1x16x32xf32>
    tpu.vector_store %arg7[%c0_42, %101, %c0_43, %c0_44], %104 {strides = array<i32>} : memref<1x8x16x32xf32, #tpu.memory_space<vmem>>, vector<1x1x16x32xf32>,
    %c1_i32_45 = arith.constant 1 : i32
    return
  }
  func.func @transform_0(%arg0: i32, %arg1: i32) -> (i32, i32, i32, i32) {
    %c0_i32 = arith.constant 0 : i32
    %c0_i32_0 = arith.constant 0 : i32
    %c0_i32_1 = arith.constant 0 : i32
    return %arg0, %arg1, %c0_i32, %c0_i32_0 : i32, i32, i32, i32
  }
  func.func @transform_1(%arg0: i32, %arg1: i32) -> (i32, i32, i32) {
    %c0_i32 = arith.constant 0 : i32
    %c0_i32_0 = arith.constant 0 : i32
    %c0_i32_1 = arith.constant 0 : i32
    return %arg0, %c0_i32, %c0_i32_0 : i32, i32, i32
  }
  func.func @transform_2(%arg0: i32, %arg1: i32) -> (i32, i32) {
    %c0_i32 = arith.constant 0 : i32
    %c0_i32_0 = arith.constant 0 : i32
    %c0_i32_1 = arith.constant 0 : i32
    return %c0_i32, %c0_i32_0 : i32, i32
  }
  func.func @transform_3(%arg0: i32, %arg1: i32) -> (i32, i32) {
    %c0_i32 = arith.constant 0 : i32
    %c0_i32_0 = arith.constant 0 : i32
    %c0_i32_1 = arith.constant 0 : i32
    return %c0_i32, %c0_i32_0 : i32, i32
  }
  func.func @transform_4(%arg0: i32, %arg1: i32) -> (i32, i32) {
    %c0_i32 = arith.constant 0 : i32
    %c0_i32_0 = arith.constant 0 : i32
    %c0_i32_1 = arith.constant 0 : i32
    return %c0_i32, %c0_i32_0 : i32, i32
  }
  func.func @transform_5(%arg0: i32, %arg1: i32) -> (i32, i32, i32, i32) {
    %c0_i32 = arith.constant 0 : i32
    %c0_i32_0 = arith.constant 0 : i32
    %c0_i32_1 = arith.constant 0 : i32
    return %arg0, %arg1, %c0_i32, %c0_i32_0 : i32, i32, i32, i32
  }
}

</mosaic_0001>

<bundles_post_ra>
// kernel: tpu_custom_call.1
= control target key start
LH: loop header
LB: loop body
LE: loop exit
PB: predicated region body
PF: predicated region fallthrough
CT: control target
= control target key end

     0   :  { %s2639_s0 = inlined_call_operand.hbm [shape: f32[2,8,16,32], index: 0, kind: input, shape index: {}]   ;;  %s2640_s1 = inlined_call_operand.hbm [shape: f32[2,16,16], index: 1, kind: input, shape index: {}]   ;;  %s2641_s2 = inlined_call_operand.hbm [shape: f32[32,32], index: 2, kind: input, shape index: {}]   ;;  %s2642_s3 = inlined_call_operand.vmem [shape: f32[1,32], index: 3, kind: input, shape index: {}]   ;;  %s2643_s4 = inlined_call_operand.hbm [shape: f32[32,32], index: 4, kind: input, shape index: {}]   ;;  %s2644_s5 = inlined_call_operand.hbm [shape: f32[2,8,16,32], index: 5, kind: output, shape index: {}]  }
   0x1   :  { %2653 = sst [smem:[#allocation18_spill]] %s2639_s0 }
   0x2   :  { %2654 = sst [smem:[#allocation19_spill]] %s2641_s2 }
   0x3   :  { %2655 = sst [smem:[#allocation20_spill]] %s2643_s4 }
   0x4   :  { %10 = vsyncpa [#allocation3], 0 }
   0x5   :  { %12 = vsyncpa [#allocation3 + $0x1], 0 }
   0x6   :  { %13 = vsyncpa [#allocation6], 0 }
   0x7   :  { %15 = vsyncpa [#allocation6 + $0x1], 0 }
   0x8   :  { %16 = vsyncpa [#allocation9], 0 }
   0x9   :  { %17 = vsyncpa [#allocation4], 0 }
   0xa   :  { %19 = vsyncpa [#allocation4 + $0x1], 0  ;;  %s2213_s18 = smov 0   ;;  %s2215_s19 = smov 0  }
   0xb   :  { %s2217_s20 = smov 0   ;;  %s2219_s21 = smov 0  }
   0xc   :  { %s2221_s22 = smov 0   ;;  %s2223_s23 = smov 0  }
   0xd LB: > { %s2244_s24 = sadd.s32 4294967295, %s2172_s23   ;;  %s1506_s25 = sadd.s32 4294967294, %s2172_s23   ;;  %s2172_s23 = sphi %s2223_s23, %s25_s23   ;;  %s2168_s22 = sphi %s2221_s22, %s2685_s22   ;;  %s2164_s21 = sphi %s2219_s21, %s2684_s21   ;;  %s2160_s20 = sphi %s2217_s20, %s2683_s20   ;;  %s2156_s19 = sphi %s2215_s19, %s2682_s19   ;;  %s2152_s18 = sphi %s2213_s18, %s2681_s18  }
   0xe   : > { %p59_p0 = scmp.ne.s32.totalorder %s2156_s19, %s2152_s18  ;;  %p2645_p1 = scmp.eq.s32.totalorder %s2244_s24, 0 }
   0xf   : > { %p180_p3 = scmp.eq.s32.totalorder %s1506_s25, 1  ;;  %p1507_p5 = scmp.ge.s32.totalorder %s2172_s23, 1 }
  0x10   : > { %p2253_p4 = por %p2645_p1, %p59_p0  ;;  %p187_p7 = scmp.lt.s32.totalorder %s2172_s23, 3 }
  0x11   : > { %p2258_p6 = por %p180_p3, %p59_p0  ;;  %s2174_s29 = smov [#allocation7]  }
  0x12   : > { %s2656_s26 = scalar_select %p2253_p4, 1, 0 }
  0x13   : > { %s2657_s27 = scalar_select %p2258_p6, 1, 0 }
  0x14   : > { %p2263_p8 = pnand %p1507_p5, %p187_p7  ;;  %s199_s30 = sshll.u32 %s2174_s29, 4  ;;  %s2267_s30 = int_to_ptr.vmem [resolvable:$true] %s199_s30 }
  0x15   : > { %s2175_s7 = smov [#allocation8]   ;;  %s2660_s2 = sld [smem:[#allocation19_spill]] }
  0x16   : > { %p1884_p9 = pneg %p2263_p8  ;;  %s215_s8 = sshll.u32 %s2175_s7, 4  ;;  %s2278_s8 = int_to_ptr.vmem [resolvable:$true] %s215_s8 }
  0x18   : > { %p2274_p11 = pnand %p1884_p9, %p2645_p1 }
  0x1a   : > { %p1964_p13 = pneg %p2274_p11 }
  0x1b   : > { %s1962_s11 = scalar_lea.hbm %s2660_s2, 512 }
  0x1c   : > { %p1963_p12 = scmp.ne.s32.totalorder %s2660_s2, %s1962_s11  ;;  %p1969_p5 = scmp.lt.u32.totalorder %s1962_s11, %s2660_s2 }
  0x1e   : > { %p1965_p0 = pnand %p1964_p13, %p1963_p12 }
  0x20   : > { %p1966_p3 = pneg %p1965_p0 }
  0x22   : > { %p1971_p7 = pnand %p1969_p5, %p1966_p3 }
  0x24   : > { %1974 = shalt.err (!%p1971_p7)
}
  0x25   : > { %s1975_s16 = scalar_lea.vmem %s2267_s30, 512  ;;  %p1983_p2 = scmp.lt.s32.totalorder %s2267_s30, %s2267_s30 }
  0x26   : > { %p1976_p9 = scmp.ne.s32.totalorder %s2267_s30, %s1975_s16  ;;  %p1984_p12 = scmp.lt.s32.totalorder %s1975_s16, %s1975_s16 }
  0x28   : > { %p1978_p10 = pnand %p1976_p9, %p1964_p13  ;;  %p1985_p0 = por %p1984_p12, %p1983_p2 }
  0x2a   : > { %p1979_p1 = pneg %p1978_p10 }
  0x2c   : > { %p1986_p6 = pnand %p1985_p0, %p1979_p1 }
  0x2e   : > { %1989 = shalt.err (!%p1986_p6)
}
  0x2f   : > { %s2646_s17 = smov 128   ;;  %s2648_s25 = smov 8  }
  0x30   : > { %1887 = dma.hbm_to_vmem [thread:$0]  (!%p2274_p11), %s2660_s2, 512, %s2267_s30, [#allocation6], %s2646_s17, %s2646_s17, %s2648_s25  }
  0x31   : > { %s2661_s4 = sld [smem:[#allocation20_spill]] }
  0x37   : > { %s1990_s11 = scalar_lea.hbm %s2661_s4, 512 }
  0x38   : > { %p1991_p1 = scmp.ne.s32.totalorder %s2661_s4, %s1990_s11  ;;  %p1997_p10 = scmp.lt.u32.totalorder %s1990_s11, %s2661_s4 }
  0x3a   : > { %p1993_p2 = pnand %p1991_p1, %p1964_p13 }
  0x3c   : > { %p1994_p6 = pneg %p1993_p2 }
  0x3e   : > { %p1999_p3 = pnand %p1997_p10, %p1994_p6 }
  0x40   : > { %2002 = shalt.err (!%p1999_p3)
}
  0x41   : > { %s2003_s30 = scalar_lea.vmem %s2278_s8, 512  ;;  %p2011_p12 = scmp.lt.s32.totalorder %s2278_s8, %s2278_s8 }
  0x42   : > { %p2004_p5 = scmp.ne.s32.totalorder %s2278_s8, %s2003_s30  ;;  %p2012_p0 = scmp.lt.s32.totalorder %s2003_s30, %s2003_s30 }
  0x44   : > { %p2006_p7 = pnand %p2004_p5, %p1964_p13  ;;  %p2013_p1 = por %p2012_p0, %p2011_p12 }
  0x46   : > { %p2007_p9 = pneg %p2006_p7 }
  0x48   : > { %p2014_p2 = pnand %p2013_p1, %p2007_p9 }
  0x4a   : > { %2017 = shalt.err (!%p2014_p2)
}
  0x4b   : > { %1890 = dma.hbm_to_vmem [thread:$0]  (!%p2274_p11), %s2661_s4, 512, %s2278_s8, [#allocation9], %s2646_s17, %s2646_s17, %s2648_s25  }
  0x4c   : > { %s37_s6 = sadd.s32 1, %s2168_s22  ;;  %s46_s7 = sadd.s32 1, %s2160_s20 }
  0x4d   : > { %p39_p13 = scmp.ge.s32.totalorder %s37_s6, 2  ;;  %p53_p6 = scmp.ne.s32.totalorder %s2160_s20, %s2156_s19 }
  0x4e   : > { %p54_p10 = scmp.eq.s32.totalorder %s2172_s23, 0  ;;  %p1904_p3 = scmp.lt.s32.totalorder %s2172_s23, 2 }
  0x4f   : > { %s2687_s6 = smov (%p39_p13, %s37_s6), 0  ;;  %p2663_p7 = scmp.eq.s32.totalorder %s2244_s24, 1 }
  0x50   : > { %2662 = sst [smem:[#allocation16_spill]] %s2687_s6  ;;  %p55_p5 = por %p54_p10, %p53_p6 }
  0x51   : > { %p2348_p9 = por %p2663_p7, %p53_p6  ;;  %s41_s10 = ssub.s32 %s2168_s22, %s2687_s6 }
  0x52   : > { %s2355_s11 = sand.u32 1, %s2160_s20   ;;  %p44_p11 = scmp.eq.s32.totalorder %s41_s10, 0 }
  0x53   : > { %s2664_s9 = scalar_select %p2348_p9, 1, 0 }
  0x54   : > { %s1511_s8 = sshll.u32 %s2355_s11, 7  ;;  %s1591_s12 = sshll.u32 %s2168_s22, 11 }
  0x55   : > { %s2360_s13 = scalar_select %p44_p11, %s2160_s20, %s46_s7  }
  0x56   : > { %s2666_s0 = sld [smem:[#allocation18_spill]]  ;;  %s233_s16 = scalar_lea.vmem [#allocation2], %s1511_s8 }
  0x57   : > { %2665 = sst [smem:[#allocation17_spill]] %s2360_s13  ;;  %s243_s29 = sshll.u32 %s233_s16, 4  ;;  %s2373_s29 = int_to_ptr.vmem [resolvable:$true] %s243_s29 }
  0x58   : > { %p2369_p12 = pnand %p1904_p3, %p55_p5  ;;  %s230_s10 = scalar_lea.sflag [#allocation3], %s2355_s11 }
  0x5a   : > { %p2020_p1 = pneg %p2369_p12 }
  0x5c   : > { %s2365_s30 = scalar_lea.hbm %s2666_s0, %s1591_s12  ;;  %s2023_s15 = scalar_lea.hbm %s2666_s0, 4096 }
  0x5d   : > { %s2018_s14 = scalar_lea.hbm %s2365_s30, 2048  ;;  %p2024_p6 = scmp.lt.u32.totalorder %s2365_s30, %s2666_s0 }
  0x5e   : > { %p2019_p0 = scmp.ne.s32.totalorder %s2365_s30, %s2018_s14  ;;  %p2025_p10 = scmp.lt.u32.totalorder %s2023_s15, %s2018_s14 }
  0x5f   : > { %p2027_p5 = scmp.lt.u32.totalorder %s2018_s14, %s2365_s30 }
  0x60   : > { %p2021_p2 = pnand %p2020_p1, %p2019_p0  ;;  %p2026_p3 = por %p2025_p10, %p2024_p6 }
  0x62   : > { %p2022_p13 = pneg %p2021_p2  ;;  %p2028_p7 = por %p2027_p5, %p2026_p3 }
  0x64   : > { %p2029_p11 = pnand %p2028_p7, %p2022_p13 }
  0x66   : > { %2032 = shalt.err (!%p2029_p11)
}
  0x67   : > { %s2033_s7 = scalar_lea.vmem %s2373_s29, 2048  ;;  %s2178_s8 = smov [#allocation2]  }
  0x68   : > { %p2034_p0 = scmp.ne.s32.totalorder %s2373_s29, %s2033_s7  ;;  %s2038_s12 = sshll.u32 %s2178_s8, 4  ;;  %s2039_s12 = int_to_ptr.vmem [resolvable:$false] %s2038_s12 }
  0x69   : > { %s2040_s25 = scalar_lea.vmem %s2039_s12, 4096  ;;  %p2041_p4 = scmp.lt.s32.totalorder %s2373_s29, %s2039_s12 }
  0x6a   : > { %p2036_p2 = pnand %p2034_p0, %p2020_p1  ;;  %p2042_p6 = scmp.lt.s32.totalorder %s2040_s25, %s2033_s7 }
  0x6c   : > { %p2037_p9 = pneg %p2036_p2  ;;  %p2043_p10 = por %p2042_p6, %p2041_p4 }
  0x6e   : > { %p2044_p3 = pnand %p2043_p10, %p2037_p9 }
  0x70   : > { %2047 = shalt.err (!%p2044_p3)
}
  0x71   : > { %s2668_s14 = smov 8   ;;  %s2669_s15 = smov 128  }
  0x72   : > { %1894 = dma.hbm_to_vmem [thread:$0]  (!%p2369_p12), %s2365_s30, 2048, %s2373_s29, %s230_s10, %s2669_s15, %s2669_s15, %s2668_s14  }
  0x73   : > { %s1514_s16 = sshll.u32 %s2355_s11, 4  ;;  %s1592_s8 = sshll.u32 %s2168_s22, 8 }
  0x74   : > { %s2412_s25 = scalar_lea.hbm %s2640_s1, %s1592_s8  ;;  %s257_s0 = scalar_lea.vmem [#allocation5], %s1514_s16 }
  0x75   : > { %s264_s2 = sshll.u32 %s257_s0, 4  ;;  %s2670_s4 = sand.u32 1, %s2172_s23   ;;  %s2414_s2 = int_to_ptr.vmem [resolvable:$true] %s264_s2 }
  0x76   : > { %s2418_s6 = scalar_lea.sflag [#allocation6], %s2670_s4  ;;  %s2048_s13 = scalar_lea.hbm %s2412_s25, 256 }
  0x77   : > { %p2049_p4 = scmp.ne.s32.totalorder %s2412_s25, %s2048_s13  ;;  %s2053_s29 = scalar_lea.hbm %s2640_s1, 512 }
  0x78   : > { %p2054_p5 = scmp.lt.u32.totalorder %s2412_s25, %s2640_s1  ;;  %p2055_p7 = scmp.lt.u32.totalorder %s2053_s29, %s2048_s13 }
  0x79   : > { %p2051_p9 = pnand %p2049_p4, %p2020_p1  ;;  %p2057_p0 = scmp.lt.u32.totalorder %s2048_s13, %s2412_s25 }
  0x7a   : > { %p2056_p11 = por %p2055_p7, %p2054_p5 }
  0x7b   : > { %p2052_p13 = pneg %p2051_p9 }
  0x7c   : > { %p2058_p2 = por %p2057_p0, %p2056_p11 }
  0x7e   : > { %p2059_p6 = pnand %p2058_p2, %p2052_p13 }
  0x80   : > { %2062 = shalt.err (!%p2059_p6)
}
  0x81   : > { %s2063_s0 = scalar_lea.vmem %s2414_s2, 256  ;;  %s2179_s4 = smov [#allocation5]  }
  0x82   : > { %p2064_p10 = scmp.ne.s32.totalorder %s2414_s2, %s2063_s0  ;;  %s2068_s16 = sshll.u32 %s2179_s4, 4  ;;  %s2069_s16 = int_to_ptr.vmem [resolvable:$false] %s2068_s16 }
  0x83   : > { %s2070_s7 = scalar_lea.vmem %s2069_s16, 512  ;;  %p2071_p9 = scmp.lt.s32.totalorder %s2414_s2, %s2069_s16 }
  0x84   : > { %p2066_p3 = pnand %p2064_p10, %p2020_p1  ;;  %p2072_p5 = scmp.lt.s32.totalorder %s2070_s7, %s2063_s0 }
  0x86   : > { %p2067_p4 = pneg %p2066_p3  ;;  %p2073_p7 = por %p2072_p5, %p2071_p9 }
  0x88   : > { %p2074_p11 = pnand %p2073_p7, %p2067_p4 }
  0x8a   : > { %2077 = shalt.err (!%p2074_p11)
}
  0x8b   : > { %1897 = dma.hbm_to_vmem [thread:$0]  (!%p2369_p12), %s2412_s25, 256, %s2414_s2, %s2418_s6, %s2669_s15, %s2669_s15, %s2668_s14  }
  0x8c   : > { %276 = sbr.rel (%p2263_p8) target bundleno = 645 (0x285), region = 40  ;;  %s2450_s13 = sand.u32 (!%p2263_p8), 1, %s2156_s19  }
  0x8d   : > { %s1518_s12 = sshll.u32 (!%p2263_p8), %s2450_s13, 7  ;;  %s279_s11 = scalar_lea.sflag (!%p2263_p8), [#allocation3], %s2450_s13 }
  0x8e   : > { %s2456_s17 = scalar_lea.vmem (!%p2263_p8), [#allocation2], %s1518_s12  ;;  %p2671_p1 = scmp.ne.s32.totalorder (!%p2263_p8), %s2656_s26, 0 }
  0x93   : > { %2131 = dma.done.wait (%p2671_p1), %s279_s11, 2048  }
  0x94   : > { %2133 = vsyncadd (%p2671_p1), %s279_s11, 4294965248  ;;  %s287_s2 = sand.u32 1, %s2244_s24   ;;  %s1519_s28 = sshll.u32 %s2450_s13, 4 }
  0x95   : > { %s288_s6 = scalar_lea.sflag [#allocation6], %s287_s2  ;;  %s2464_s14 = scalar_lea.vmem [#allocation5], %s1519_s28 }
  0x96   : > { %2135 = dma.done.wait (%p2671_p1), %s288_s6, 256  }
  0x97   : > { %2137 = vsyncadd (%p2671_p1), %s288_s6, 4294967040  ;;  %p2672_p8 = scmp.eq.s32.totalorder %s2244_s24, 0 }
  0x99   : > { %2139 = dma.done.wait (%p2672_p8), [#allocation6], 512   ;;  %p2673_p12 = pmov %p2672_p8 }
  0x9a   : > { %p2674_p13 = pmov %p2672_p8 }
  0x9b   : > { %2141 = vsyncadd (%p2673_p12), [#allocation6], 4294966784 }
  0x9c   : > { %2143 = dma.done.wait (%p2674_p13), [#allocation9], 512   ;;  %p2675_p0 = pmov %p2672_p8 }
  0x9d   : > { %vm362_vm0 = vcmask 261120   ;;  %v335_v0 = vld [vmem:[#allocation7] sm:$0xff]  ;;  %v336_v1 = vld [vmem:[#allocation7 + $0x8] sm:$0xff]  ;;  %v337_v2 = vld [vmem:[#allocation7 + $0x10] sm:$0xff]  ;;  %vm707_vm1 = vcmask 130048   ;;  %s2549_s15 = scalar_lea.vmem [#allocation10], %s1518_s12 }
  0x9e   : > { %2145 = vsyncadd (%p2675_p0), [#allocation9], 4294966784  ;;  %v1786_v3 = vpack.c.bf16 %v336_v1, %v335_v0  ;;  %v338_v4 = vld [vmem:[#allocation7 + $0x18] sm:$0xff]  ;;  %v346_v5 = vld [vmem:[%s2456_s17] sm:$0xff]  ;;  %s1593_s25 = sshll.u32 %s2164_s21, 11  ;;  %s1369_s30 = sshll.u32 %s2549_s15, 4  ;;  %s2586_s30 = int_to_ptr.vmem [resolvable:$true] %s1369_s30 }
  0x9f   : > { %v1790_v6 = vpack.c.bf16 %v338_v4, %v337_v2  ;;  %1674 = vmatprep.mubr.msk.f32.mxu0 %vm362_vm0, %v346_v5  ;;  %v354_v7 = vld [vmem:[%s2456_s17 + $0x40] sm:$0xff]  ;;  %v340_v9 = vld [vmem:[#allocation8 + $0x8] sm:$0xff]  ;;  %v341_v10 = vld [vmem:[#allocation8 + $0x10] sm:$0xff]  ;;  %s2584_s8 = scalar_lea.hbm %s2644_s5, %s1593_s25  ;;  %s1353_s21 = scalar_lea.sflag [#allocation4], %s2450_s13 }
  0xa0   : > { %1787 = vmatprep.subr.bf16.mxu0 %v1786_v3  ;;  %1718 = vmatprep.mubr.msk.f32.mxu1 %vm362_vm0, %v354_v7  ;;  %v339_v8 = vld [vmem:[#allocation8] sm:$0xff]  ;;  %v342_v11 = vld [vmem:[#allocation8 + $0x18] sm:$0xff]  ;;  %v347_v12 = vld [vmem:[%s2456_s17 + $0x8] sm:$0xff]  ;;  %s2078_s0 = scalar_lea.vmem %s2586_s30, 2048  ;;  %p2676_p6 = scmp.ne.s32.totalorder %s2664_s9, 0 }
  0xa1   : > { %1789 = vmatpush3.bf16.msra.mxu0 %v1786_v3  ;;  %v1794_v13 = vpack.c.bf16 %v340_v9, %v339_v8  ;;  %v1798_v14 = vpack.c.bf16 %v342_v11, %v341_v10  ;;  %v348_v15 = vld [vmem:[%s2456_s17 + $0x10] sm:$0xff]  ;;  %v349_v16 = vld [vmem:[%s2456_s17 + $0x18] sm:$0xff]  ;;  %v350_v17 = vld [vmem:[%s2456_s17 + $0x20] sm:$0xff]  ;;  %p2079_p2 = scmp.ne.s32.totalorder %s2586_s30, %s2078_s0  ;;  %s2180_s4 = smov [#allocation10]  }
  0xa2   : > { %1791 = vmatprep.subr.bf16.mxu0 %v1790_v6  ;;  %v351_v18 = vld [vmem:[%s2456_s17 + $0x28] sm:$0xff]  ;;  %v352_v19 = vld [vmem:[%s2456_s17 + $0x30] sm:$0xff]  ;;  %v353_v22 = vld [vmem:[%s2456_s17 + $0x38] sm:$0xff]  ;;  %s2082_s16 = sshll.u32 %s2180_s4, 4  ;;  %s2083_s16 = int_to_ptr.vmem [resolvable:$false] %s2082_s16 }
  0xa3   : > { %1834 = vmatprep.subr.bf16.mxu1 %v1794_v13  ;;  %v355_v20 = vld [vmem:[%s2456_s17 + $0x48] sm:$0xff]  ;;  %v356_v21 = vld [vmem:[%s2456_s17 + $0x50] sm:$0xff]  ;;  %v357_v23 = vld [vmem:[%s2456_s17 + $0x58] sm:$0xff]  ;;  %p2080_p10 = pnand %p2079_p2, %p2676_p6  ;;  %s2084_s7 = scalar_lea.vmem %s2083_s16, 4096 }
  0xa4   : > { %1836 = vmatpush3.bf16.msra.mxu1 %v1794_v13  ;;  %v358_v24 = vld [vmem:[%s2456_s17 + $0x60] sm:$0xff]  ;;  %v359_v25 = vld [vmem:[%s2456_s17 + $0x68] sm:$0xff]  ;;  %v360_v26 = vld [vmem:[%s2456_s17 + $0x70] sm:$0xff]  ;;  %p2085_p4 = scmp.lt.s32.totalorder %s2586_s30, %s2083_s16  ;;  %p2086_p9 = scmp.lt.s32.totalorder %s2084_s7, %s2078_s0 }
  0xa5   : > { %1793 = vmatpush3.bf16.msra.mxu0 %v1790_v6  ;;  %1835 = vmatprep.subr.bf16.mxu1 %v1798_v14  ;;  %v361_v27 = vld [vmem:[%s2456_s17 + $0x78] sm:$0xff]  ;;  %v333_v28 = vld [vmem:[%s2464_s14] sm:$0xff]  ;;  %p2081_p3 = pneg %p2080_p10 }
  0xa6   : > { %1795 = vmatprep.subr.bf16.mxu0 %v1794_v13  ;;  %v334_v34 = vld [vmem:[%s2464_s14 + $0x8] sm:$0xff]  ;;  %v1539_v62 = vld [vmem:[%s2642_s3] ss:$0 sm:$0xff]  ;;  %p2087_p5 = por %p2086_p9, %p2085_p4 }
  0xa8   : > { %1675 = vmatmul.mubr.msk.f32.vlgmr.msra.gmra.mrb[0].mxu0 %vm362_vm0, %v347_v12  ;;  %1837 = vmatpush3.bf16.msra.mxu1 %v1798_v14  ;;  %p2088_p7 = pnand %p2087_p5, %p2081_p3 }
  0xa9   : > { %1677 = vmatprep.mubr.msk.f32.mxu0 %vm362_vm0, %v348_v15  ;;  %1797 = vmatpush3.bf16.msra.mxu0 %v1794_v13 }
  0xaa   : > { %1799 = vmatprep.subr.bf16.mxu0 %v1798_v14 }
  0xab   : > { %1719 = vmatmul.mubr.msk.f32.vlgmr.msra.gmra.mrb[0].mxu1 %vm362_vm0, %v355_v20 }
  0xac   : > { %1678 = vmatmul.mubr.msk.f32.gmra.mrb[2].mxu0 %vm362_vm0, %v349_v16  ;;  %1721 = vmatprep.mubr.msk.f32.mxu1 %vm362_vm0, %v356_v21 }
  0xad   : > { %1680 = vmatprep.mubr.msk.f32.mxu0 %vm362_vm0, %v350_v17  ;;  %1801 = vmatpush3.bf16.msra.mxu0 %v1798_v14 }
  0xaf   : > { %1722 = vmatmul.mubr.msk.f32.gmra.mrb[2].mxu1 %vm362_vm0, %v357_v23 }
  0xb0   : > { %1681 = vmatmul.mubr.msk.f32.gmra.mrb[4].mxu0 %vm362_vm0, %v351_v18  ;;  %1724 = vmatprep.mubr.msk.f32.mxu1 %vm362_vm0, %v358_v24 }
  0xb1   : > { %1683 = vmatprep.mubr.msk.f32.mxu0 %vm362_vm0, %v352_v19 }
  0xb3   : > { %1725 = vmatmul.mubr.msk.f32.gmra.mrb[4].mxu1 %vm362_vm0, %v359_v25 }
  0xb4   : > { %1684 = vmatmul.mubr.msk.f32.gmra.mrb[6].mxu0 %vm362_vm0, %v353_v22  ;;  %1727 = vmatprep.mubr.msk.f32.mxu1 %vm362_vm0, %v360_v26 }
  0xb5   : > { %1686 = vmatprep.mubr.msk.f32.mxu0 %vm362_vm0, %v354_v7 }
  0xb7   : > { %1728 = vmatmul.mubr.msk.f32.gmra.mrb[6].mxu1 %vm362_vm0, %v361_v27 }
  0xb8   : > { %1687 = vmatmul.mubr.msk.f32.gmra.mrb[8].mxu0 %vm362_vm0, %v355_v20  ;;  %1734 = vmatprep.mubr.msk.f32.mxu1 %vm707_vm1, %v333_v28 }
  0xb9   : > { %1689 = vmatprep.mubr.msk.f32.mxu0 %vm362_vm0, %v356_v21 }
  0xbc   : > { %1690 = vmatmul.mubr.msk.f32.gmra.mrb[10].mxu0 %vm362_vm0, %v357_v23 }
  0xbd   : > { %1692 = vmatprep.mubr.msk.f32.mxu0 %vm362_vm0, %v358_v24 }
  0xc0   : > { %1693 = vmatmul.mubr.msk.f32.gmra.mrb[12].mxu0 %vm362_vm0, %v359_v25 }
  0xc1   : > { %1695 = vmatprep.mubr.msk.f32.mxu0 %vm362_vm0, %v360_v26 }
  0xc4   : > { %1696 = vmatmul.mubr.msk.f32.gmra.mrb[14].mxu0 %vm362_vm0, %v361_v27 }
  0xc5   : > { %1706 = vmatprep.mubr.msk.f32.mxu0 %vm362_vm0, %v346_v5 }
  0xc8   : > { %1707 = vmatmul.mubr.msk.f32.vlgmr.msra.gmra.mrb[16].mxu0 %vm362_vm0, %v347_v12 }
  0xc9   : > { %1709 = vmatprep.mubr.msk.f32.mxu0 %vm362_vm0, %v348_v15 }
  0xcc   : > { %1710 = vmatmul.mubr.msk.f32.gmra.mrb[18].mxu0 %vm362_vm0, %v349_v16 }
  0xcd   : > { %1712 = vmatprep.mubr.msk.f32.mxu0 %vm362_vm0, %v350_v17 }
  0xd0   : > { %1713 = vmatmul.mubr.msk.f32.gmra.mrb[20].mxu0 %vm362_vm0, %v351_v18 }
  0xd1   : > { %1715 = vmatprep.mubr.msk.f32.mxu0 %vm362_vm0, %v352_v19 }
  0xd4   : > { %1716 = vmatmul.mubr.msk.f32.gmra.mrb[22].mxu0 %vm362_vm0, %v353_v22 }
 0x17b   : > { %v1676_v29 = vpop.f32.mrb[0].mxu0 }
 0x17c   : > { %v477_v30 = vpop.f32.mrb[1].mxu0 }
 0x17d   : > { %v1802_v31 = vpack.c.bf16 %v1676_v29, %v477_v30 }
 0x17f   : > { %v1679_v32 = vpop.f32.mrb[2].mxu0  ;;  %1803 = vmatprep.subr.bf16.mxu1 %v1802_v31 }
 0x180   : > { %v487_v33 = vpop.f32.mrb[3].mxu0  ;;  %1805 = vmatpush3.bf16.msra.mxu1 %v1802_v31 }
 0x181   : > { %v1806_v35 = vpack.c.bf16 %v1679_v32, %v487_v33 }
 0x183   : > { %v1682_v36 = vpop.f32.mrb[4].mxu0  ;;  %1735 = vmatmul.mubr.msk.f32.vlgmr.msra.gmra.mrb[8].mxu1 %vm707_vm1, %v334_v34  ;;  %1807 = vmatprep.subr.bf16.mxu1 %v1806_v35 }
 0x184   : > { %v497_v37 = vpop.f32.mrb[5].mxu0  ;;  %1809 = vmatpush3.bf16.msra.mxu1 %v1806_v35  ;;  %1741 = vmatprep.mubr.msk.f32.mxu1 %vm707_vm1, %v333_v28 }
 0x185   : > { %v1810_v38 = vpack.c.bf16 %v1682_v36, %v497_v37 }
 0x187   : > { %v1685_v39 = vpop.f32.mrb[6].mxu0  ;;  %1742 = vmatmul.mubr.msk.f32.vlgmr.msra.gmra.mrb[10].mxu1 %vm707_vm1, %v334_v34  ;;  %1811 = vmatprep.subr.bf16.mxu1 %v1810_v38 }
 0x188   : > { %v507_v40 = vpop.f32.mrb[7].mxu0  ;;  %1813 = vmatpush3.bf16.msra.mxu1 %v1810_v38  ;;  %1748 = vmatprep.mubr.msk.f32.mxu1 %vm707_vm1, %v333_v28 }
 0x189   : > { %v1814_v41 = vpack.c.bf16 %v1685_v39, %v507_v40 }
 0x18b   : > { %v1688_v42 = vpop.f32.mrb[8].mxu0  ;;  %1749 = vmatmul.mubr.msk.f32.vlgmr.msra.gmra.mrb[12].mxu1 %vm707_vm1, %v334_v34  ;;  %1815 = vmatprep.subr.bf16.mxu1 %v1814_v41 }
 0x18c   : > { %v517_v43 = vpop.f32.mrb[9].mxu0  ;;  %1817 = vmatpush3.bf16.msra.mxu1 %v1814_v41  ;;  %1755 = vmatprep.mubr.msk.f32.mxu1 %vm707_vm1, %v333_v28 }
 0x18d   : > { %v1818_v44 = vpack.c.bf16 %v1688_v42, %v517_v43 }
 0x18f   : > { %v1691_v45 = vpop.f32.mrb[10].mxu0  ;;  %1756 = vmatmul.mubr.msk.f32.vlgmr.msra.gmra.mrb[14].mxu1 %vm707_vm1, %v334_v34  ;;  %1819 = vmatprep.subr.bf16.mxu1 %v1818_v44 }
 0x190   : > { %v527_v46 = vpop.f32.mrb[11].mxu0  ;;  %1821 = vmatpush3.bf16.msra.mxu1 %v1818_v44  ;;  %1762 = vmatprep.mubr.msk.f32.mxu1 %vm707_vm1, %v333_v28 }
 0x191   : > { %v1822_v47 = vpack.c.bf16 %v1691_v45, %v527_v46 }
 0x193   : > { %v1694_v48 = vpop.f32.mrb[12].mxu0  ;;  %1763 = vmatmul.mubr.msk.f32.vlgmr.msra.gmra.mrb[0].mxu1 %vm707_vm1, %v334_v34  ;;  %1823 = vmatprep.subr.bf16.mxu1 %v1822_v47 }
 0x194   : > { %v537_v49 = vpop.f32.mrb[13].mxu0  ;;  %1825 = vmatpush3.bf16.msra.mxu1 %v1822_v47  ;;  %1769 = vmatprep.mubr.msk.f32.mxu1 %vm707_vm1, %v333_v28 }
 0x195   : > { %v1826_v50 = vpack.c.bf16 %v1694_v48, %v537_v49 }
 0x197   : > { %v1697_v51 = vpop.f32.mrb[14].mxu0  ;;  %1770 = vmatmul.mubr.msk.f32.vlgmr.msra.gmra.mrb[2].mxu1 %vm707_vm1, %v334_v34  ;;  %1827 = vmatprep.subr.bf16.mxu1 %v1826_v50 }
 0x198   : > { %v547_v52 = vpop.f32.mrb[15].mxu0  ;;  %1829 = vmatpush3.bf16.msra.mxu1 %v1826_v50  ;;  %1776 = vmatprep.mubr.msk.f32.mxu1 %vm707_vm1, %v333_v28 }
 0x199   : > { %v1830_v53 = vpack.c.bf16 %v1697_v51, %v547_v52 }
 0x19b   : > { %1777 = vmatmul.mubr.msk.f32.vlgmr.msra.gmra.mrb[4].mxu1 %vm707_vm1, %v334_v34  ;;  %1831 = vmatprep.subr.bf16.mxu1 %v1830_v53  ;;  %v1708_v54 = vpop.f32.mrb[16].mxu0 }
 0x19c   : > { %1833 = vmatpush3.bf16.msra.mxu1 %v1830_v53  ;;  %1783 = vmatprep.mubr.msk.f32.mxu1 %vm707_vm1, %v333_v28  ;;  %v628_v55 = vpop.f32.mrb[17].mxu0  ;;  %v634_v63 = vadd.f32 %v1708_v54, %v1539_v62 }
 0x19d   : > { %v629_v0 = vadd.f32 %v1539_v62, %v628_v55 }
 0x19f   : > { %1784 = vmatmul.mubr.msk.f32.vlgmr.msra.gmra.mrb[6].mxu1 %vm707_vm1, %v334_v34  ;;  %v1711_v56 = vpop.f32.mrb[18].mxu0 }
 0x1a0   : > { %v638_v57 = vpop.f32.mrb[19].mxu0  ;;  %v644_v4 = vadd.f32 %v1711_v56, %v1539_v62 }
 0x1a1   : > { %v639_v6 = vadd.f32 %v1539_v62, %v638_v57 }
 0x1a3   : > { %v1714_v58 = vpop.f32.mrb[20].mxu0 }
 0x1a4   : > { %v648_v59 = vpop.f32.mrb[21].mxu0  ;;  %v654_v10 = vadd.f32 %v1714_v58, %v1539_v62 }
 0x1a5   : > { %v649_v12 = vadd.f32 %v1539_v62, %v648_v59 }
 0x1a7   : > { %v1717_v60 = vpop.f32.mrb[22].mxu0 }
 0x1a8   : > { %v658_v61 = vpop.f32.mrb[23].mxu0  ;;  %v664_v16 = vadd.f32 %v1717_v60, %v1539_v62 }
 0x1a9   : > { %v659_v18 = vadd.f32 %v1539_v62, %v658_v61 }
 0x256   : > { %v1736_v1 = vpop.f32.mrb[8].mxu1 }
 0x257   : > { %v780_v2 = vpop.f32.mrb[9].mxu1  ;;  %v786_v3 = vadd.f32 %v1736_v1, %v634_v63 }
 0x258   : > { %v781_v5 = vadd.f32 %v780_v2, %v629_v0 }
 0x259   : > { %791 = vst.msk [vmem:[%s2549_s15 + $0x8] sm:$0xff] %vm362_vm0, %v786_v3 }
 0x25a   : > { %v1743_v7 = vpop.f32.mrb[10].mxu1  ;;  %790 = vst.msk [vmem:[%s2549_s15] sm:$0xff] %vm362_vm0, %v781_v5 }
 0x25b   : > { %v858_v8 = vpop.f32.mrb[11].mxu1  ;;  %v864_v9 = vadd.f32 %v1743_v7, %v644_v4 }
 0x25c   : > { %v859_v11 = vadd.f32 %v858_v8, %v639_v6 }
 0x25d   : > { %1561 = vst.msk [vmem:[%s2549_s15 + $0x18] sm:$0xff] %vm362_vm0, %v864_v9 }
 0x25e   : > { %v1750_v13 = vpop.f32.mrb[12].mxu1  ;;  %1560 = vst.msk [vmem:[%s2549_s15 + $0x10] sm:$0xff] %vm362_vm0, %v859_v11 }
 0x25f   : > { %v938_v14 = vpop.f32.mrb[13].mxu1  ;;  %v944_v15 = vadd.f32 %v1750_v13, %v654_v10 }
 0x260   : > { %v939_v17 = vadd.f32 %v938_v14, %v649_v12 }
 0x261   : > { %1565 = vst.msk [vmem:[%s2549_s15 + $0x28] sm:$0xff] %vm362_vm0, %v944_v15 }
 0x262   : > { %v1757_v19 = vpop.f32.mrb[14].mxu1  ;;  %1564 = vst.msk [vmem:[%s2549_s15 + $0x20] sm:$0xff] %vm362_vm0, %v939_v17 }
 0x263   : > { %v1018_v20 = vpop.f32.mrb[15].mxu1  ;;  %v1024_v21 = vadd.f32 %v1757_v19, %v664_v16 }
 0x264   : > { %v1019_v22 = vadd.f32 %v1018_v20, %v659_v18 }
 0x265   : > { %1569 = vst.msk [vmem:[%s2549_s15 + $0x38] sm:$0xff] %vm362_vm0, %v1024_v21 }
 0x266   : > { %v1764_v23 = vpop.f32.mrb[0].mxu1  ;;  %1568 = vst.msk [vmem:[%s2549_s15 + $0x30] sm:$0xff] %vm362_vm0, %v1019_v22 }
 0x267   : > { %v1854_v24 = vadd.f32 %v1764_v23, %v1539_v62  ;;  %v1098_v25 = vpop.f32.mrb[1].mxu1 }
 0x268   : > { %v1855_v26 = vadd.f32 %v1539_v62, %v1098_v25 }
 0x269   : > { %1573 = vst.msk [vmem:[%s2549_s15 + $0x48] sm:$0xff] %vm362_vm0, %v1854_v24 }
 0x26a   : > { %1572 = vst.msk [vmem:[%s2549_s15 + $0x40] sm:$0xff] %vm362_vm0, %v1855_v26  ;;  %v1771_v27 = vpop.f32.mrb[2].mxu1 }
 0x26b   : > { %v1856_v28 = vadd.f32 %v1771_v27, %v1539_v62  ;;  %v1178_v29 = vpop.f32.mrb[3].mxu1 }
 0x26c   : > { %v1857_v30 = vadd.f32 %v1539_v62, %v1178_v29 }
 0x26d   : > { %1577 = vst.msk [vmem:[%s2549_s15 + $0x58] sm:$0xff] %vm362_vm0, %v1856_v28 }
 0x26e   : > { %1576 = vst.msk [vmem:[%s2549_s15 + $0x50] sm:$0xff] %vm362_vm0, %v1857_v30  ;;  %v1778_v31 = vpop.f32.mrb[4].mxu1 }
 0x26f   : > { %v1858_v32 = vadd.f32 %v1778_v31, %v1539_v62  ;;  %v1258_v33 = vpop.f32.mrb[5].mxu1 }
 0x270   : > { %v1859_v34 = vadd.f32 %v1539_v62, %v1258_v33 }
 0x271   : > { %1581 = vst.msk [vmem:[%s2549_s15 + $0x68] sm:$0xff] %vm362_vm0, %v1858_v32 }
 0x272   : > { %1580 = vst.msk [vmem:[%s2549_s15 + $0x60] sm:$0xff] %vm362_vm0, %v1859_v34  ;;  %v1785_v35 = vpop.f32.mrb[6].mxu1 }
 0x273   : > { %v1860_v36 = vadd.f32 %v1785_v35, %v1539_v62  ;;  %v1338_v37 = vpop.f32.mrb[7].mxu1 }
 0x274   : > { %v1861_v38 = vadd.f32 %v1539_v62, %v1338_v37 }
 0x275   : > { %1585 = vst.msk [vmem:[%s2549_s15 + $0x78] sm:$0xff] %vm362_vm0, %v1860_v36 }
 0x276   : > { %1584 = vst.msk [vmem:[%s2549_s15 + $0x70] sm:$0xff] %vm362_vm0, %v1861_v38 }
 0x277   : > { %2091 = shalt.err (!%p2088_p7)
}
 0x278   : > { %s2092_s12 = scalar_lea.hbm %s2584_s8, 2048  ;;  %s2096_s2 = scalar_lea.hbm %s2644_s5, 4096 }
 0x279   : > { %p2093_p11 = scmp.ne.s32.totalorder %s2584_s8, %s2092_s12  ;;  %p2097_p12 = scmp.lt.u32.totalorder %s2584_s8, %s2644_s5 }
 0x27a   : > { %p2098_p13 = scmp.lt.u32.totalorder %s2096_s2, %s2092_s12  ;;  %p2100_p2 = scmp.lt.u32.totalorder %s2092_s12, %s2584_s8 }
 0x27b   : > { %p2094_p1 = pnand %p2093_p11, %p2676_p6 }
 0x27c   : > { %p2099_p0 = por %p2098_p13, %p2097_p12 }
 0x27d   : > { %p2095_p8 = pneg %p2094_p1 }
 0x27e   : > { %p2101_p10 = por %p2100_p2, %p2099_p0 }
 0x280   : > { %p2102_p3 = pnand %p2101_p10, %p2095_p8 }
 0x282   : > { %2105 = shalt.err (!%p2102_p3)
}
 0x283   : > { %s2181_s14 = smov 128   ;;  %s2182_s24 = smov 8  }
 0x284   : > { %1882 = dma.vmem_to_hbm [thread:$0]  (%p2676_p6), %s2586_s30, 2048, %s2584_s8, %s1353_s21, %s2181_s14, %s2181_s14, %s2182_s24  }
 0x285 PF: > { %s1384_s26 = sand.u32 1, %s2152_s18   ;;  %p2677_p4 = scmp.ne.s32.totalorder %s2657_s27, 0 }
 0x286   : > { %p2678_p9 = scmp.ge.s32.totalorder %s2172_s23, 2  ;;  %s1385_s15 = scalar_lea.sflag [#allocation4], %s1384_s26 }
 0x288   : > { %p1899_p5 = pnand %p2678_p9, %p2677_p4 }
 0x28a   : > { %2147 = dma.done.wait (!%p1899_p5), %s1385_s15, 2048  }
 0x28b   : > { %2149 = vsyncadd (!%p1899_p5), %s1385_s15, 4294965248  ;;  %s25_s23 = sadd.s32 1, %s2172_s23   ;;  %s2679_s25 = sld [smem:[#allocation17_spill]] }
 0x28c   : > { %p22_p7 = scmp.ge.s32.totalorder %s25_s23, 4   ;;  %s2680_s9 = sld [smem:[#allocation16_spill]] }
 0x28d   : > { %s2681_s18 = smov %s2156_s19  ;;  %s2682_s19 = smov %s2160_s20 }
 0x28e   : > { %s2684_s21 = smov %s2168_s22  ;;  %24 = sbr.rel (!%p22_p7) target bundleno = 13 (0xd), region = 115 }
 0x291   : > { %s2683_s20 = smov %s2679_s25 }
 0x292   : > { %s2685_s22 = smov %s2680_s9 }
 0x295   :  { %1390 = vsyncpa [#allocation3], 1 }
 0x296   :  { %1392 = vsyncpa [#allocation3 + $0x1], 1 }
 0x297   :  { %1393 = vsyncpa [#allocation6], 1 }
 0x298   :  { %1395 = vsyncpa [#allocation6 + $0x1], 1 }
 0x299   :  { %1396 = vsyncpa [#allocation9], 1 }
 0x29a   :  { %1397 = vsyncpa [#allocation4], 1 }
 0x29b   :  { %1399 = vsyncpa [#allocation4 + $0x1], 1 }

</bundles_post_ra>
